<compile_context>
chip_gen: v7x
topology: tpu7x:2x2x1
jax: 0.10.0
libtpu: 0.0.40
codegen_flags: <defaults>
</compile_context>

<pallas_src>
import math
from functools import partial

import jax
import jax.numpy as jnp
from jax import lax
from jax.experimental import pallas as pl
from jax.experimental.pallas import tpu as pltpu

BN_EPS = 1e-5
_LANE = 128
_SUBLANE = 8


def _round_up(n, m):
    return ((n + m - 1) // m) * m


def _pick_tile(dim_p, cap):
    """Largest multiple of 128 that divides dim_p and is <= cap (dim_p % 128 == 0)."""
    t = max(_LANE, min(dim_p, (cap // _LANE) * _LANE))
    while dim_p % t:
        t -= _LANE
    return t


def _linear_bn_relu_kernel(x_ref, w_ref, b_ref, o_ref, acc_ref, *,
                           inv_batch, use_bf16):
    # grid = (feature tiles j [parallel], K tiles k [arbitrary, last])
    k = pl.program_id(1)

    @pl.when(k == 0)
    def _():
        acc_ref[...] = jnp.zeros_like(acc_ref)

    x = x_ref[...]          # [B_p, TK]
    w = w_ref[...]          # [TN, TK]  (PyTorch layout, no transpose needed)
    if use_bf16:
        x = x.astype(jnp.bfloat16)
        w = w.astype(jnp.bfloat16)
    # Contract last dim of both operands: [B_p, TK] . [TN, TK] -> [B_p, TN]
    acc_ref[...] += lax.dot_general(
        x, w, dimension_numbers=(((1,), (1,)), ((), ())),
        preferred_element_type=jnp.float32)

    @pl.when(k == pl.num_programs(1) - 1)
    def _():
        y = acc_ref[...]                                  # [B_p, TN] f32
        # Single-pass BatchNorm1d stats per feature column (biased variance).
        # Padded batch rows are exactly zero, so sums are over real rows only.
        s1 = jnp.sum(y, axis=0, keepdims=True)
        s2 = jnp.sum(y * y, axis=0, keepdims=True)
        mean = s1 * inv_batch
        var = jnp.maximum(s2 * inv_batch - mean * mean, 0.0)
        y = (y - mean) * lax.rsqrt(var + BN_EPS)
        y = y + b_ref[...]                                # bias after BN
        o_ref[...] = jnp.maximum(y, 0.0).astype(o_ref.dtype)


def linear_block(x, weight, bias, *, use_bf16=True, tn_cap=512, tk_cap=512):
    """x: [B, in_dim] f32, weight: [out_dim, in_dim] f32 (PyTorch layout),
    bias: [out_dim] f32.  Returns [B, out_dim] f32."""
    B, in_dim = x.shape
    out_dim, in_dim_w = weight.shape
    assert in_dim == in_dim_w

    # Pad to TPU-friendly shapes: batch -> x8 sublanes, features/K -> x128 lanes.
    B_p = _round_up(B, _SUBLANE)
    K_p = _round_up(in_dim, _LANE)
    N_p = _round_up(out_dim, _LANE)

    x_p = jnp.zeros((B_p, K_p), jnp.float32).at[:B, :in_dim].set(
        x.astype(jnp.float32))
    w_p = jnp.zeros((N_p, K_p), jnp.float32).at[:out_dim, :in_dim].set(
        weight.astype(jnp.float32))
    b_p = jnp.zeros((1, N_p), jnp.float32).at[0, :out_dim].set(
        bias.astype(jnp.float32))

    # Tile sizes are modest (<= 512) so double-buffered tiles fit comfortably
    # within the default scoped VMEM on v5e/v6e and v7x's smaller 64 MiB VMEM.
    TN = _pick_tile(N_p, tn_cap)
    TK = _pick_tile(K_p, tk_cap)
    grid = (N_p // TN, K_p // TK)

    kernel = partial(_linear_bn_relu_kernel,
                     inv_batch=1.0 / B, use_bf16=use_bf16)

    cost = pl.CostEstimate(
        flops=2 * B_p * K_p * N_p,
        transcendentals=0,
        bytes_accessed=4 * (B_p * K_p + N_p * K_p + N_p + B_p * N_p))

    out_p = pl.pallas_call(
        kernel,
        out_shape=jax.ShapeDtypeStruct((B_p, N_p), jnp.float32),
        grid_spec=pltpu.PrefetchScalarGridSpec(
            num_scalar_prefetch=0,
            grid=grid,
            in_specs=[
                pl.BlockSpec((B_p, TK), lambda j, k: (0, k)),   # x
                pl.BlockSpec((TN, TK), lambda j, k: (j, k)),    # weight
                pl.BlockSpec((1, TN), lambda j, k: (0, j)),     # bias
            ],
            out_specs=pl.BlockSpec((B_p, TN), lambda j, k: (0, j)),
            scratch_shapes=[pltpu.VMEM((B_p, TN), jnp.float32)],
        ),
        compiler_params=pltpu.CompilerParams(
            dimension_semantics=("parallel", "arbitrary")),
        cost_estimate=cost,
    )(x_p, w_p, b_p)

    return out_p[:B, :out_dim]


def init_params(key, in_dim, out_dim):
    # Mirrors reset_parameters(): uniform(-stdv, stdv), stdv = 1/sqrt(in_dim)
    stdv = 1.0 / math.sqrt(in_dim)
    kw, kb = jax.random.split(key)
    weight = jax.random.uniform(kw, (out_dim, in_dim), jnp.float32,
                                minval=-stdv, maxval=stdv)
    bias = jax.random.uniform(kb, (out_dim,), jnp.float32,
                              minval=-stdv, maxval=stdv)
    return weight, bias


if __name__ == "__main__":
    key = jax.random.PRNGKey(0)
    k_x, k_p = jax.random.split(key)

    batch, in_dim, out_dim = 8, 32, 16
    x = jax.random.normal(k_x, (batch, in_dim), jnp.float32)
    weight, bias = init_params(k_p, in_dim, out_dim)

    out = linear_block(x, weight, bias)                    # bf16-MXU path (default)
    out_f32 = linear_block(x, weight, bias, use_bf16=False)
    jax.block_until_ready((out, out_f32))

    # plain-JAX reference (f32)
    y_ref = x @ weight.T
    mean = jnp.mean(y_ref, axis=0, keepdims=True)
    var = jnp.mean((y_ref - mean) ** 2, axis=0, keepdims=True)
    y_ref = (y_ref - mean) / jnp.sqrt(var + BN_EPS) + bias[None, :]
    y_ref = jnp.maximum(y_ref, 0.0)

    assert out.shape == (batch, out_dim)
    # f32-matmul path matches tightly; bf16-MXU path within bf16 tolerance.
    assert jnp.allclose(out_f32, y_ref, atol=1e-4, rtol=1e-4), \
        float(jnp.max(jnp.abs(out_f32 - y_ref)))
    assert jnp.allclose(out, y_ref, atol=5e-2, rtol=5e-2), \
        float(jnp.max(jnp.abs(out - y_ref)))

    print("KERNEL_OK")
</pallas_src>

<mosaic_0001>
module attributes {stable_mosaic.version = 11 : i64} {
  func.func @_linear_bn_relu_kernel(%arg0: i32, %arg1: i32, %arg2: memref<8x128xf32, #tpu.memory_space<vmem>>, %arg3: memref<128x128xf32, #tpu.memory_space<vmem>>, %arg4: memref<1x128xf32, #tpu.memory_space<vmem>>, %arg5: memref<8x128xf32, #tpu.memory_space<vmem>>, %arg6: memref<8x128xf32, #tpu.memory_space<vmem>>) attributes {dimension_semantics = [#tpu.dimension_semantics<parallel>, #tpu.dimension_semantics<arbitrary>], iteration_bounds = array<i64: 1, 1>, scalar_prefetch = 0 : i64, scratch_operands = 1 : i64, tpu.core_type = #tpu.core_type<tc>, window_params = [{transform_indices = @transform_0, window_bounds = array<i64: 8, 128>}, {transform_indices = @transform_1, window_bounds = array<i64: 128, 128>}, {transform_indices = @transform_2, window_bounds = array<i64: 1, 128>}, {transform_indices = @transform_3, window_bounds = array<i64: 8, 128>}]} {
    %c0_i32 = arith.constant 0 : i32
    %0 = arith.cmpi eq, %arg1, %c0_i32 : i32
    %1 = arith.extui %0 : i1 to i32
    %c0_i32_0 = arith.constant 0 : i32
    %2 = arith.cmpi ne, %1, %c0_i32_0 : i32
    scf.if %2 {
      %cst_10 = arith.constant 0.000000e+00 : f32
      %14 = vector.broadcast %cst_10 : f32 to vector<8x128xf32>
      %c0_11 = arith.constant 0 : index
      %c0_12 = arith.constant 0 : index
      %15 = vector.load %arg6[%c0_11, %c0_12] : memref<8x128xf32, #tpu.memory_space<vmem>>, vector<8x128xf32>
      tpu.vector_store %arg6[%c0_11, %c0_12], %14 {strides = array<i32>} : memref<8x128xf32, #tpu.memory_space<vmem>>, vector<8x128xf32>,
    } else {
    }
    %c0 = arith.constant 0 : index
    %c0_1 = arith.constant 0 : index
    %3 = vector.load %arg2[%c0, %c0_1] : memref<8x128xf32, #tpu.memory_space<vmem>>, vector<8x128xf32>
    %c0_2 = arith.constant 0 : index
    %c0_3 = arith.constant 0 : index
    %4 = vector.load %arg3[%c0_2, %c0_3] : memref<128x128xf32, #tpu.memory_space<vmem>>, vector<128x128xf32>
    %5 = arith.truncf %3 : vector<8x128xf32> to vector<8x128xbf16>
    %6 = arith.truncf %4 : vector<128x128xf32> to vector<128x128xbf16>
    %c0_4 = arith.constant 0 : index
    %c0_5 = arith.constant 0 : index
    %7 = vector.load %arg6[%c0_4, %c0_5] : memref<8x128xf32, #tpu.memory_space<vmem>>, vector<8x128xf32>
    %cst = arith.constant dense<0.000000e+00> : vector<8x128xf32>
    %8 = tpu.matmul %5, %6, %cst {dimension_numbers = #tpu.dot_dimension_numbers<[1], [1], [0], [0], [0, 0, 1, 0], [], []>} : vector<8x128xbf16>, vector<128x128xbf16>, vector<8x128xf32> -> vector<8x128xf32>
    %9 = arith.addf %7, %8 : vector<8x128xf32>
    %c0_6 = arith.constant 0 : index
    %c0_7 = arith.constant 0 : index
    %10 = vector.load %arg6[%c0_6, %c0_7] : memref<8x128xf32, #tpu.memory_space<vmem>>, vector<8x128xf32>
    tpu.vector_store %arg6[%c0_6, %c0_7], %9 {strides = array<i32>} : memref<8x128xf32, #tpu.memory_space<vmem>>, vector<8x128xf32>,
    %c0_i32_8 = arith.constant 0 : i32
    %11 = arith.cmpi eq, %arg1, %c0_i32_8 : i32
    %12 = arith.extui %11 : i1 to i32
    %c0_i32_9 = arith.constant 0 : i32
    %13 = arith.cmpi ne, %12, %c0_i32_9 : i32
    scf.if %13 {
      %c0_10 = arith.constant 0 : index
      %c0_11 = arith.constant 0 : index
      %14 = vector.load %arg6[%c0_10, %c0_11] : memref<8x128xf32, #tpu.memory_space<vmem>>, vector<8x128xf32>
      %cst_12 = arith.constant dense<0.000000e+00> : vector<128xf32>
      %15 = vector.multi_reduction <add>, %14, %cst_12 [0] : vector<8x128xf32> to vector<128xf32>
      %16 = vector.shape_cast %15 : vector<128xf32> to vector<1x128xf32>
      %17 = arith.mulf %14, %14 : vector<8x128xf32>
      %cst_13 = arith.constant dense<0.000000e+00> : vector<128xf32>
      %18 = vector.multi_reduction <add>, %17, %cst_13 [0] : vector<8x128xf32> to vector<128xf32>
      %19 = vector.shape_cast %18 : vector<128xf32> to vector<1x128xf32>
      %cst_14 = arith.constant 1.250000e-01 : f32
      %20 = vector.broadcast %cst_14 : f32 to vector<1x128xf32>
      %21 = arith.mulf %16, %20 : vector<1x128xf32>
      %cst_15 = arith.constant 1.250000e-01 : f32
      %22 = vector.broadcast %cst_15 : f32 to vector<1x128xf32>
      %23 = arith.mulf %19, %22 : vector<1x128xf32>
      %24 = arith.mulf %21, %21 : vector<1x128xf32>
      %25 = arith.subf %23, %24 : vector<1x128xf32>
      %cst_16 = arith.constant 0.000000e+00 : f32
      %26 = vector.broadcast %cst_16 : f32 to vector<1x128xf32>
      %27 = arith.maximumf %25, %26 : vector<1x128xf32>
      %28 = vector.broadcast %21 : vector<1x128xf32> to vector<8x128xf32>
      %29 = arith.subf %14, %28 : vector<8x128xf32>
      %cst_17 = arith.constant 9.99999974E-6 : f32
      %30 = vector.broadcast %cst_17 : f32 to vector<1x128xf32>
      %31 = arith.addf %27, %30 : vector<1x128xf32>
      %32 = math.rsqrt %31 : vector<1x128xf32>
      %33 = vector.broadcast %32 : vector<1x128xf32> to vector<8x128xf32>
      %34 = arith.mulf %29, %33 : vector<8x128xf32>
      %c0_18 = arith.constant 0 : index
      %c0_19 = arith.constant 0 : index
      %35 = vector.load %arg4[%c0_18, %c0_19] : memref<1x128xf32, #tpu.memory_space<vmem>>, vector<1x128xf32>
      %36 = vector.broadcast %35 : vector<1x128xf32> to vector<8x128xf32>
      %37 = arith.addf %34, %36 : vector<8x128xf32>
      %cst_20 = arith.constant 0.000000e+00 : f32
      %38 = vector.broadcast %cst_20 : f32 to vector<8x128xf32>
      %39 = arith.maximumf %37, %38 : vector<8x128xf32>
      %c0_21 = arith.constant 0 : index
      %c0_22 = arith.constant 0 : index
      %40 = vector.load %arg5[%c0_21, %c0_22] : memref<8x128xf32, #tpu.memory_space<vmem>>, vector<8x128xf32>
      tpu.vector_store %arg5[%c0_21, %c0_22], %39 {strides = array<i32>} : memref<8x128xf32, #tpu.memory_space<vmem>>, vector<8x128xf32>,
    } else {
    }
    return
  }
  func.func @transform_0(%arg0: i32, %arg1: i32) -> (i32, i32) {
    %c0_i32 = arith.constant 0 : i32
    %c0_i32_0 = arith.constant 0 : i32
    return %c0_i32, %arg1 : i32, i32
  }
  func.func @transform_1(%arg0: i32, %arg1: i32) -> (i32, i32) {
    %c0_i32 = arith.constant 0 : i32
    return %arg0, %arg1 : i32, i32
  }
  func.func @transform_2(%arg0: i32, %arg1: i32) -> (i32, i32) {
    %c0_i32 = arith.constant 0 : i32
    %c0_i32_0 = arith.constant 0 : i32
    return %c0_i32, %arg0 : i32, i32
  }
  func.func @transform_3(%arg0: i32, %arg1: i32) -> (i32, i32) {
    %c0_i32 = arith.constant 0 : i32
    %c0_i32_0 = arith.constant 0 : i32
    return %c0_i32, %arg0 : i32, i32
  }
}

</mosaic_0001>

<bundles_post_ra>
// kernel: tpu_custom_call.1
= control target key start
LH: loop header
LB: loop body
LE: loop exit
PB: predicated region body
PF: predicated region fallthrough
CT: control target
= control target key end

     0   :  { %8 = vsyncpa [#allocation4], 0  ;;  %s352_s0 = inlined_call_operand.hbm [shape: f32[8,128], index: 0, kind: input, shape index: {}]   ;;  %s353_s1 = inlined_call_operand.hbm [shape: f32[128,128], index: 1, kind: input, shape index: {}]   ;;  %s354_s2 = inlined_call_operand.vmem [shape: f32[1,128], index: 2, kind: input, shape index: {}]   ;;  %s355_s3 = inlined_call_operand.hbm [shape: f32[8,128], index: 3, kind: output, shape index: {}]  }
   0x1   :  { %9 = vsyncpa [#allocation7], 0 }
   0x2   :  { %10 = vsyncpa [#allocation5], 0  ;;  %s279_s12 = smov [#allocation3]   ;;  %s280_s14 = smov [#allocation6]  }
   0x3   :  { %s17_s13 = sshll.u32 %s279_s12, 4  ;;  %s26_s15 = sshll.u32 %s280_s14, 4  ;;  %s18_s13 = int_to_ptr.vmem [resolvable:$true] %s17_s13  ;;  %s306_s15 = int_to_ptr.vmem [resolvable:$true] %s26_s15 }
   0x4   :  { %s207_s18 = scalar_lea.hbm %s352_s0, 128 }
   0x5   :  { %p208_p0 = scmp.ne.s32.totalorder %s352_s0, %s207_s18  ;;  %p211_p1 = scmp.lt.u32.totalorder %s207_s18, %s352_s0 }
   0x7   :  { %p213_p2 = pnand %p211_p1, %p208_p0 }
   0x9   :  { %216 = shalt.err (!%p213_p2)
}
   0xa   :  { %s217_s23 = scalar_lea.vmem %s18_s13, 128  ;;  %p222_p4 = scmp.lt.s32.totalorder %s18_s13, %s18_s13 }
   0xb   :  { %p218_p3 = scmp.ne.s32.totalorder %s18_s13, %s217_s23  ;;  %p223_p5 = scmp.lt.s32.totalorder %s217_s23, %s217_s23 }
   0xd   :  { %p224_p6 = por %p223_p5, %p222_p4 }
   0xf   :  { %p225_p7 = pnand %p224_p6, %p218_p3 }
  0x11   :  { %228 = shalt.err (!%p225_p7)
}
  0x12   :  { %20 = dma.hbm_to_vmem [thread:$0]  %s352_s0, 128, %s18_s13, [#allocation4]  }
  0x13   :  { %s229_s28 = scalar_lea.hbm %s353_s1, 2048 }
  0x14   :  { %p230_p8 = scmp.ne.s32.totalorder %s353_s1, %s229_s28  ;;  %p233_p9 = scmp.lt.u32.totalorder %s229_s28, %s353_s1 }
  0x16   :  { %p235_p10 = pnand %p233_p9, %p230_p8 }
  0x18   :  { %238 = shalt.err (!%p235_p10)
}
  0x19   :  { %s239_s6 = scalar_lea.vmem %s306_s15, 2048  ;;  %p244_p12 = scmp.lt.s32.totalorder %s306_s15, %s306_s15 }
  0x1a   :  { %p240_p11 = scmp.ne.s32.totalorder %s306_s15, %s239_s6  ;;  %p245_p13 = scmp.lt.s32.totalorder %s239_s6, %s239_s6 }
  0x1c   :  { %p246_p0 = por %p245_p13, %p244_p12 }
  0x1e   :  { %p247_p1 = pnand %p246_p0, %p240_p11 }
  0x20   :  { %250 = shalt.err (!%p247_p1)
}
  0x21   :  { %s281_s0 = smov 128   ;;  %s282_s7 = smov 8  }
  0x22   :  { %32 = dma.hbm_to_vmem [thread:$0]  %s353_s1, 2048, %s306_s15, [#allocation7], %s281_s0, %s281_s0, %s282_s7  }
  0x23   :  { %273 = dma.done.wait [#allocation4], 128  }
  0x24   :  { %274 = vsyncadd [#allocation4], 4294967168 }
  0x25   :  { %275 = dma.done.wait [#allocation7], 2048  }
  0x26   :  { %276 = vsyncadd [#allocation7], 4294965248  ;;  %v283_v0 = vmov 0.0   ;;  %vm284_vm0 = vmmov 0   ;;  %v48_v1 = vld [vmem:[#allocation6] sm:$0xff]  ;;  %v49_v2 = vld [vmem:[#allocation6 + $0x8] sm:$0xff] }
  0x27   :  { %178 = vmatprep.subr.bf16.mxu0 %v283_v0  ;;  %194 = vmatprep.mubr.msk.bf16.mxu0 %vm284_vm0, %v283_v0  ;;  %v65_v3 = vpack.c.bf16 %v49_v2, %v48_v1  ;;  %v50_v4 = vld [vmem:[#allocation6 + $0x10] sm:$0xff]  ;;  %v51_v5 = vld [vmem:[#allocation6 + $0x18] sm:$0xff]  ;;  %v52_v7 = vld [vmem:[#allocation6 + $0x20] sm:$0xff]  ;;  %s285_s11 = smov [#allocation8]  }
  0x28   :  { %v66_v6 = vpack.c.bf16 %v51_v5, %v50_v4  ;;  %v53_v8 = vld [vmem:[#allocation6 + $0x28] sm:$0xff]  ;;  %v54_v10 = vld [vmem:[#allocation6 + $0x30] sm:$0xff]  ;;  %v55_v11 = vld [vmem:[#allocation6 + $0x38] sm:$0xff]  ;;  %s158_s12 = sshll.u32 %s285_s11, 4  ;;  %s159_s12 = int_to_ptr.vmem [resolvable:$true] %s158_s12 }
  0x29   :  { %179 = vmatpush3.bf16.xpose.msra.mxu0 %v65_v3  ;;  %v67_v9 = vpack.c.bf16 %v53_v8, %v52_v7  ;;  %v68_v12 = vpack.c.bf16 %v55_v11, %v54_v10  ;;  %v56_v13 = vld [vmem:[#allocation6 + $0x40] sm:$0xff]  ;;  %v57_v14 = vld [vmem:[#allocation6 + $0x48] sm:$0xff]  ;;  %v58_v16 = vld [vmem:[#allocation6 + $0x50] sm:$0xff]  ;;  %s251_s13 = scalar_lea.vmem %s159_s12, 128  ;;  %p256_p3 = scmp.lt.s32.totalorder %s159_s12, %s159_s12 }
  0x2a   :  { %180 = vmatprep.subr.bf16.mxu0 %v283_v0  ;;  %v69_v15 = vpack.c.bf16 %v57_v14, %v56_v13  ;;  %v59_v17 = vld [vmem:[#allocation6 + $0x58] sm:$0xff]  ;;  %v60_v19 = vld [vmem:[#allocation6 + $0x60] sm:$0xff]  ;;  %v61_v20 = vld [vmem:[#allocation6 + $0x68] sm:$0xff]  ;;  %p252_p2 = scmp.ne.s32.totalorder %s159_s12, %s251_s13  ;;  %p257_p4 = scmp.lt.s32.totalorder %s251_s13, %s251_s13 }
  0x2b   :  { %v70_v18 = vpack.c.bf16 %v59_v17, %v58_v16  ;;  %v71_v21 = vpack.c.bf16 %v61_v20, %v60_v19  ;;  %v62_v22 = vld [vmem:[#allocation6 + $0x70] sm:$0xff]  ;;  %v63_v23 = vld [vmem:[#allocation6 + $0x78] sm:$0xff] }
  0x2c   :  { %v72_v24 = vpack.c.bf16 %v63_v23, %v62_v22  ;;  %v47_v25 = vld [vmem:[#allocation3] sm:$0xff]  ;;  %p258_p5 = por %p257_p4, %p256_p3 }
  0x2d   :  { %v64_v26 = vpack.c.bf16 %v47_v25, %v47_v25  ;;  %v168_v52 = vld [vmem:[%s354_s2] ss:$0 sm:$0xff] }
  0x2e   :  { %p259_p6 = pnand %p258_p5, %p252_p2 }
  0x31   :  { %181 = vmatpush3.bf16.xpose.msra.mxu0 %v66_v6 }
  0x32   :  { %182 = vmatprep.subr.bf16.mxu0 %v283_v0 }
  0x39   :  { %183 = vmatpush3.bf16.xpose.msra.mxu0 %v67_v9 }
  0x3a   :  { %184 = vmatprep.subr.bf16.mxu0 %v283_v0 }
  0x41   :  { %185 = vmatpush3.bf16.xpose.msra.mxu0 %v68_v12 }
  0x42   :  { %186 = vmatprep.subr.bf16.mxu0 %v283_v0 }
  0x49   :  { %187 = vmatpush3.bf16.xpose.msra.mxu0 %v69_v15 }
  0x4a   :  { %188 = vmatprep.subr.bf16.mxu0 %v283_v0 }
  0x51   :  { %189 = vmatpush3.bf16.xpose.msra.mxu0 %v70_v18 }
  0x52   :  { %190 = vmatprep.subr.bf16.mxu0 %v283_v0 }
  0x59   :  { %191 = vmatpush3.bf16.xpose.msra.mxu0 %v71_v21 }
  0x5a   :  { %192 = vmatprep.subr.bf16.mxu0 %v283_v0 }
  0x61   :  { %193 = vmatpush3.bf16.xpose.msra.mxu0 %v72_v24 }
  0x68   :  { %195 = vmatmul.mubr.bf16.vlgmr.msra.gmra.mrb[0].mxu0 %v64_v26 }
 0x13b   :  { %v108_v27 = vpop.f32.mrb[0].mxu0 }
 0x13c   :  { %v120_v28 = vrot.slane %v108_v27, 4  ;;  %v126_v29 = vmul.f32 %v108_v27, %v108_v27  ;;  %v196_v30 = vpop.f32.mrb[1].mxu0 }
 0x13d   :  { %v111_v31 = vpop.f32.mrb[2].mxu0 }
 0x13e   :  { %v121_v32 = vadd.f32 %v120_v28, %v108_v27  ;;  %v127_v33 = vrot.slane %v126_v29, 4  ;;  %v197_v34 = vpop.f32.mrb[3].mxu0 }
 0x140   :  { %v122_v35 = vrot.slane %v121_v32, 2  ;;  %v128_v36 = vadd.f32 %v127_v33, %v126_v29 }
 0x142   :  { %v123_v37 = vadd.f32 %v122_v35, %v121_v32  ;;  %v129_v38 = vrot.slane %v128_v36, 2 }
 0x144   :  { %v124_v39 = vrot.slane %v123_v37, 1  ;;  %v130_v40 = vadd.f32 %v129_v38, %v128_v36 }
 0x146   :  { %v125_v41 = vadd.f32 %v124_v39, %v123_v37  ;;  %v131_v42 = vrot.slane %v130_v40, 1 }
 0x148   :  { %v132_v43 = vadd.f32 %v131_v42, %v130_v40  ;;  %v133_v44 = vmul.f32 0.125, %v125_v41 }
 0x14a   :  { %v134_v45 = vmul.f32 0.125, %v132_v43  ;;  %v135_v46 = vmul.f32 %v133_v44, %v133_v44  ;;  %v138_v50 = vsub.f32 %v108_v27, %v133_v44 }
 0x14c   :  { %v136_v47 = vsub.f32 %v134_v45, %v135_v46 }
 0x14e   :  { %v137_v48 = vmax.f32 %v136_v47, 0.0 }
 0x150   :  { %v139_v49 = vadd.f32 1e-05, %v137_v48 }
 0x152   :  { %205 = vrsqrt.f32 %v139_v49 }
 0x15c   :  { %v206_v51 = vpop.eup %205 }
 0x15d   :  { %v141_v53 = vmul.f32 %v206_v51, %v138_v50 }
 0x15f   :  { %v149_v54 = vadd.f32 %v168_v52, %v141_v53 }
 0x161   :  { %v150_v55 = vmax.f32 %v149_v54, 0.0 }
 0x163   :  { %151 = vst [vmem:[#allocation8] sm:$0xff] %v150_v55 }
 0x164   :  { %262 = shalt.err (!%p259_p6)
}
 0x165   :  { %s263_s16 = scalar_lea.hbm %s355_s3, 128 }
 0x166   :  { %p264_p7 = scmp.ne.s32.totalorder %s355_s3, %s263_s16  ;;  %p267_p8 = scmp.lt.u32.totalorder %s263_s16, %s355_s3 }
 0x168   :  { %p269_p9 = pnand %p267_p8, %p264_p7 }
 0x16a   :  { %272 = shalt.err (!%p269_p9)
}
 0x16b   :  { %161 = dma.vmem_to_hbm [thread:$0]  %s159_s12, 128, %s355_s3, [#allocation5]  }
 0x16c   :  { %277 = dma.done.wait [#allocation5], 128  }
 0x16d   :  { %278 = vsyncadd [#allocation5], 4294967168 }
 0x16e   :  { %165 = vsyncpa [#allocation4], 1 }
 0x16f   :  { %166 = vsyncpa [#allocation7], 1 }
 0x170   :  { %167 = vsyncpa [#allocation5], 1 }

</bundles_post_ra>
